<compile_context>
chip_gen: v6e
topology: v6e:2x2x1
jax: 0.10.0
libtpu: 0.0.40
codegen_flags: <defaults>
</compile_context>

<pallas_src>
import functools
import numpy as np
import jax
import jax.numpy as jnp
from jax.experimental import pallas as pl
from jax.experimental.pallas import tpu as pltpu

NEG_BIG = -1e30
POS_BIG = 1e30
MATMUL_DTYPE = jnp.bfloat16      # MXU operand dtype (accumulation stays f32)
PADDED_IN = 16                   # node-feature width 15 -> 16 (zero-padded)

PARAM_ORDER = (
    'c11_w', 'c11_b', 'c12_w', 'c12_b', 'bn1_scale', 'bn1_shift',
    'c21_w', 'c21_b', 'c22_w', 'c22_b', 'bn2_scale', 'bn2_shift',
    'c31_wd', 'c31_wb', 'c31_b',
    'c32_wd', 'c32_wb', 'c32_b', 'bn3_scale', 'bn3_shift',
    'c41_wd', 'c41_wb', 'c41_b',
    'c42_wd', 'c42_wb', 'c42_b', 'bn4_scale', 'bn4_shift',
    'lin1_w1', 'lin1_w2', 'lin1_w3', 'lin1_w4', 'lin1_b',
    'mlp_w0', 'mlp_b0', 'mlp_w1', 'mlp_b1',
)


# ----------------------------- in-kernel building blocks -----------------------------

def _tagconv_relu(a, x, w, b, K):
    # TAGConv + ReLU.  w = K+1 hop weights flattened to [(K+1)*Cin, Cout] so the filter
    # is applied as a single deep-contraction MXU matmul.
    taps = [x]
    xk = x
    for _ in range(K):
        xk = jnp.dot(a, xk.astype(a.dtype), preferred_element_type=jnp.float32)
        taps.append(xk)
    xs = jnp.concatenate(taps, axis=1)                                   # [N, (K+1)*Cin]
    y = jnp.dot(xs.astype(w.dtype), w, preferred_element_type=jnp.float32) + b
    return jnp.maximum(y, 0.0)


def _edgeconv(x, smask, col_f, wd, wb, b, k):
    # DynamicEdgeConv, max aggregation over the k nearest same-graph neighbours:
    #   out[i] = max_{j in kNN(i)} Linear([x_i, x_j - x_i])
    #          = x_i @ (Wa - Wb) + bias + max_{j in kNN(i)} (x_j @ Wb)
    # Ranking matrix d'[i,j] = |x_j|^2 - 2 x_i.x_j differs from the true squared
    # distance only by a per-row constant, so the neighbour selection is identical.
    # Each of the k picks is converted to a one-hot row; one-hot @ p is an exact
    # MXU "gather" of the chosen neighbour's features.
    n = x.shape[0]
    dims = (((1,), (1,)), ((), ()))
    g = jax.lax.dot_general(x, x, dims, preferred_element_type=jnp.float32)        # x x^T
    s = jax.lax.dot_general(jnp.ones_like(x), x * x, dims,
                            preferred_element_type=jnp.float32)                    # [i,j]=|x_j|^2
    d = jnp.where(smask > 0.5, s - 2.0 * g, POS_BIG)                               # cross-graph excluded
    p = jnp.dot(x.astype(wb.dtype), wb, preferred_element_type=jnp.float32)        # [N,F]
    base = jnp.dot(x.astype(wd.dtype), wd, preferred_element_type=jnp.float32) + b
    acc = jnp.full(p.shape, NEG_BIG, jnp.float32)
    for _ in range(k):                                   # k is tiny & static
        dmin = jnp.min(d, axis=1, keepdims=True)
        first = jnp.min(jnp.where(d <= dmin, col_f, float(n)), axis=1, keepdims=True)
        onehot = (col_f == first).astype(jnp.float32)    # exactly one column per row
        acc = jnp.maximum(acc, jnp.dot(onehot, p, preferred_element_type=jnp.float32))
        d = jnp.where(onehot > 0.5, POS_BIG, d)          # remove chosen neighbour
    return base + acc


def _global_max_pool(x, gmask):
    # gmask: [B,N] one-hot graph membership, x: [N,C]  ->  [B,C]
    masked = jnp.where(gmask[:, :, None] > 0.5, x[None, :, :], NEG_BIG)
    return jnp.max(masked, axis=1)


# ----------------------------- fused whole-forward kernel -----------------------------

def dynamic_class_kernel(*refs, k):
    a_ref, x_ref, gmask_ref, smask_ref = refs[:4]
    o_ref = refs[-1]
    prm = {name: ref for name, ref in zip(PARAM_ORDER, refs[4:-1])}

    a = a_ref[...]            # bf16 normalized adjacency [N,N]
    x0 = x_ref[...]           # f32 padded node features [N,16]
    gmask = gmask_ref[...]    # [B,N]
    smask = smask_ref[...]    # [N,N]
    n = x0.shape[0]
    col_f = jax.lax.broadcasted_iota(jnp.int32, (n, n), 1).astype(jnp.float32)

    def mm(x, wname):
        w = prm[wname][...]
        return jnp.dot(x.astype(w.dtype), w, preferred_element_type=jnp.float32)

    def bn(x, name):
        return x * prm[name + '_scale'][...] + prm[name + '_shift'][...]

    # ---- block 1: TAGConv(16->64,K=4) -> TAGConv(64->64,K=4) -> BN -> pool ----
    x1 = _tagconv_relu(a, x0, prm['c11_w'][...], prm['c11_b'][...], 4)
    x1 = _tagconv_relu(a, x1, prm['c12_w'][...], prm['c12_b'][...], 4)
    x1 = bn(x1, 'bn1')
    x11 = _global_max_pool(x1, gmask)

    # ---- block 2: TAGConv(64->64,K=3) -> TAGConv(64->32,K=3) -> BN -> pool ----
    x2 = _tagconv_relu(a, x1, prm['c21_w'][...], prm['c21_b'][...], 3)
    x2 = _tagconv_relu(a, x2, prm['c22_w'][...], prm['c22_b'][...], 3)
    x2 = bn(x2, 'bn2')
    x21 = _global_max_pool(x2, gmask)

    # ---- block 3: DynamicEdgeConv(32->64) -> DynamicEdgeConv(64->64) -> BN -> pool ----
    x3 = _edgeconv(x2, smask, col_f, prm['c31_wd'][...], prm['c31_wb'][...], prm['c31_b'][...], k)
    x3 = _edgeconv(x3, smask, col_f, prm['c32_wd'][...], prm['c32_wb'][...], prm['c32_b'][...], k)
    x3 = bn(x3, 'bn3')
    x31 = _global_max_pool(x3, gmask)

    # ---- block 4: DynamicEdgeConv(64->32) -> DynamicEdgeConv(32->32) -> BN -> pool ----
    x4 = _edgeconv(x3, smask, col_f, prm['c41_wd'][...], prm['c41_wb'][...], prm['c41_b'][...], k)
    x4 = _edgeconv(x4, smask, col_f, prm['c42_wd'][...], prm['c42_wb'][...], prm['c42_b'][...], k)
    x4 = bn(x4, 'bn4')
    x41 = _global_max_pool(x4, gmask)

    # ---- head: lin1 (weight pre-split per pooled block, so no concat needed)
    #            -> Linear(128,32) with its BN folded in -> ReLU -> Linear(32,out) ----
    h = (mm(x11, 'lin1_w1') + mm(x21, 'lin1_w2') + mm(x31, 'lin1_w3') + mm(x41, 'lin1_w4')
         + prm['lin1_b'][...])
    h = mm(h, 'mlp_w0') + prm['mlp_b0'][...]       # BN already folded into mlp_w0/mlp_b0
    h = jnp.maximum(h, 0.0)                        # dropout = identity at inference
    o_ref[...] = mm(h, 'mlp_w1') + prm['mlp_b1'][...]


# ----------------------------- host-side glue -----------------------------

def gcn_norm_dense(edge_index, n):
    # TAGConv gcn_norm (no self loops): A[t,s] = deg^-1/2[s] * deg^-1/2[t], deg over targets.
    row, col = edge_index[0], edge_index[1]
    ones = jnp.ones(row.shape[0], jnp.float32)
    deg = jnp.zeros((n,), jnp.float32).at[col].add(ones)
    dis = jnp.where(deg > 0, 1.0 / jnp.sqrt(jnp.maximum(deg, 1e-12)), 0.0)
    w = dis[row] * dis[col]
    return jnp.zeros((n, n), jnp.float32).at[col, row].add(w)


def dynamic_class_forward(params, x, edge_index, batch, *, num_graphs, k):
    n = x.shape[0]
    a = gcn_norm_dense(edge_index, n).astype(MATMUL_DTYPE)
    x_pad = jnp.pad(x, ((0, 0), (0, PADDED_IN - x.shape[1])))
    gmask = (jnp.arange(num_graphs)[:, None] == batch[None, :]).astype(jnp.float32)   # [B,N]
    smask = (batch[:, None] == batch[None, :]).astype(jnp.float32)                    # [N,N]

    args = [a, x_pad, gmask, smask] + [params[name] for name in PARAM_ORDER]
    out_c = params['mlp_b1'].shape[-1]
    vmem = pl.BlockSpec(memory_space=pltpu.MemorySpace.VMEM)
    return pl.pallas_call(
        functools.partial(dynamic_class_kernel, k=k),
        out_shape=jax.ShapeDtypeStruct((num_graphs, out_c), jnp.float32),
        in_specs=[vmem] * len(args),
        out_specs=vmem,
    )(*args)


def init_params(key, out_channels, in_channels=15, padded_in=PADDED_IN):
    keys = iter(jax.random.split(key, 128))

    def lin(cin, cout):
        bound = 1.0 / np.sqrt(cin)
        w = jax.random.uniform(next(keys), (cin, cout), jnp.float32, -bound, bound)
        b = jax.random.uniform(next(keys), (1, cout), jnp.float32, -bound, bound)
        return w, b

    def tag(cin, cout, K, pad_to=None):
        # K+1 hop weights, zero-padded rows if needed, flattened for one deep matmul.
        bound = 1.0 / np.sqrt(cin)
        ws = []
        for _ in range(K + 1):
            w = jax.random.uniform(next(keys), (cin, cout), jnp.float32, -bound, bound)
            if pad_to is not None and pad_to > cin:
                w = jnp.pad(w, ((0, pad_to - cin), (0, 0)))
            ws.append(w)
        wflat = jnp.concatenate(ws, axis=0).astype(MATMUL_DTYPE)
        b = jax.random.uniform(next(keys), (1, cout), jnp.float32, -bound, bound)
        return wflat, b

    def bn(c):
        w = jax.random.uniform(next(keys), (1, c), jnp.float32, 0.5, 1.5)
        b = 0.1 * jax.random.normal(next(keys), (1, c), jnp.float32)
        rm = 0.1 * jax.random.normal(next(keys), (1, c), jnp.float32)
        rv = jax.random.uniform(next(keys), (1, c), jnp.float32, 0.5, 1.5)
        scale = w / jnp.sqrt(rv + 1e-5)
        shift = b - rm * scale
        return scale, shift

    def edge(cin, cout):
        # Linear(2*cin, cout): Wa acts on x_i, Wb on (x_j - x_i); pass Wd = Wa - Wb and Wb.
        w, b = lin(2 * cin, cout)
        wa, wb = w[:cin], w[cin:]
        return (wa - wb).astype(MATMUL_DTYPE), wb.astype(MATMUL_DTYPE), b

    p = {}
    p['c11_w'], p['c11_b'] = tag(in_channels, 64, 4, pad_to=padded_in)
    p['c12_w'], p['c12_b'] = tag(64, 64, 4)
    p['bn1_scale'], p['bn1_shift'] = bn(64)
    p['c21_w'], p['c21_b'] = tag(64, 64, 3)
    p['c22_w'], p['c22_b'] = tag(64, 32, 3)
    p['bn2_scale'], p['bn2_shift'] = bn(32)
    p['c31_wd'], p['c31_wb'], p['c31_b'] = edge(32, 64)
    p['c32_wd'], p['c32_wb'], p['c32_b'] = edge(64, 64)
    p['bn3_scale'], p['bn3_shift'] = bn(64)
    p['c41_wd'], p['c41_wb'], p['c41_b'] = edge(64, 32)
    p['c42_wd'], p['c42_wb'], p['c42_b'] = edge(32, 32)
    p['bn4_scale'], p['bn4_shift'] = bn(32)

    lin1_w, p['lin1_b'] = lin(64 * 2 + 32 * 2, 128)
    p['lin1_w1'] = lin1_w[0:64].astype(MATMUL_DTYPE)       # rows for x11 (64)
    p['lin1_w2'] = lin1_w[64:96].astype(MATMUL_DTYPE)      # rows for x21 (32)
    p['lin1_w3'] = lin1_w[96:160].astype(MATMUL_DTYPE)     # rows for x31 (64)
    p['lin1_w4'] = lin1_w[160:192].astype(MATMUL_DTYPE)    # rows for x41 (32)

    # MLP Linear(128,32) with its BatchNorm folded in exactly (BN precedes the ReLU).
    w0, b0 = lin(128, 32)
    sc, sh = bn(32)
    p['mlp_w0'] = (w0 * sc).astype(MATMUL_DTYPE)
    p['mlp_b0'] = b0 * sc + sh
    w1, p['mlp_b1'] = lin(32, out_channels)
    p['mlp_w1'] = w1.astype(MATMUL_DTYPE)
    return p


# ----------------------------- main -----------------------------

if __name__ == "__main__":
    N_PER_GRAPH = 32
    NUM_GRAPHS = 2
    N = N_PER_GRAPH * NUM_GRAPHS
    K_NN = 4
    OUT_CHANNELS = 8

    root = jax.random.PRNGKey(0)
    kx, kp = jax.random.split(root)
    x = jax.random.normal(kx, (N, 15), jnp.float32)
    batch = jnp.asarray(np.repeat(np.arange(NUM_GRAPHS), N_PER_GRAPH), jnp.int32)

    # deterministic ring-style graph (symmetric), per graph
    src, dst = [], []
    for g in range(NUM_GRAPHS):
        off = g * N_PER_GRAPH
        for i in range(N_PER_GRAPH):
            for o in (1, 2):
                j = (i + o) % N_PER_GRAPH
                src += [off + i, off + j]
                dst += [off + j, off + i]
    edge_index = jnp.asarray(np.stack([src, dst]), jnp.int32)

    params = init_params(kp, OUT_CHANNELS)

    fwd = jax.jit(functools.partial(dynamic_class_forward, num_graphs=NUM_GRAPHS, k=K_NN))
    out = fwd(params, x, edge_index, batch)
    out = jax.block_until_ready(out)
    assert out.shape == (NUM_GRAPHS, OUT_CHANNELS), out.shape
    assert bool(jnp.all(jnp.isfinite(out)))
    print("KERNEL_OK")
</pallas_src>

<mosaic_0001>
module attributes {stable_mosaic.version = 11 : i64} {
  func.func private @main(%arg0: i32) attributes {dimension_semantics = [#tpu.dimension_semantics<core_parallel>], iteration_bounds = array<i64: 2>, tpu.core_type = #tpu.core_type<sc_scalar_subcore>, window_params = []} {
    return
  }
}

module attributes {stable_mosaic.version = 11 : i64} {
  func.func private @main(%arg0: i32) attributes {dimension_semantics = [#tpu.dimension_semantics<core_parallel>], iteration_bounds = array<i64: 2>, tpu.core_type = #tpu.core_type<sc_scalar_subcore>, window_params = []} {
    return
  }
}

module attributes {stable_mosaic.version = 11 : i64} {
  func.func @dynamic_class_kernel(%arg0: memref<64x64xbf16, #tpu.memory_space<vmem>>, %arg1: memref<64x16xf32, #tpu.memory_space<vmem>>, %arg2: memref<2x64xf32, #tpu.memory_space<vmem>>, %arg3: memref<64x64xf32, #tpu.memory_space<vmem>>, %arg4: memref<80x64xbf16, #tpu.memory_space<vmem>>, %arg5: memref<1x64xf32, #tpu.memory_space<vmem>>, %arg6: memref<320x64xbf16, #tpu.memory_space<vmem>>, %arg7: memref<1x64xf32, #tpu.memory_space<vmem>>, %arg8: memref<1x64xf32, #tpu.memory_space<vmem>>, %arg9: memref<1x64xf32, #tpu.memory_space<vmem>>, %arg10: memref<256x64xbf16, #tpu.memory_space<vmem>>, %arg11: memref<1x64xf32, #tpu.memory_space<vmem>>, %arg12: memref<256x32xbf16, #tpu.memory_space<vmem>>, %arg13: memref<1x32xf32, #tpu.memory_space<vmem>>, %arg14: memref<1x32xf32, #tpu.memory_space<vmem>>, %arg15: memref<1x32xf32, #tpu.memory_space<vmem>>, %arg16: memref<32x64xbf16, #tpu.memory_space<vmem>>, %arg17: memref<32x64xbf16, #tpu.memory_space<vmem>>, %arg18: memref<1x64xf32, #tpu.memory_space<vmem>>, %arg19: memref<64x64xbf16, #tpu.memory_space<vmem>>, %arg20: memref<64x64xbf16, #tpu.memory_space<vmem>>, %arg21: memref<1x64xf32, #tpu.memory_space<vmem>>, %arg22: memref<1x64xf32, #tpu.memory_space<vmem>>, %arg23: memref<1x64xf32, #tpu.memory_space<vmem>>, %arg24: memref<64x32xbf16, #tpu.memory_space<vmem>>, %arg25: memref<64x32xbf16, #tpu.memory_space<vmem>>, %arg26: memref<1x32xf32, #tpu.memory_space<vmem>>, %arg27: memref<32x32xbf16, #tpu.memory_space<vmem>>, %arg28: memref<32x32xbf16, #tpu.memory_space<vmem>>, %arg29: memref<1x32xf32, #tpu.memory_space<vmem>>, %arg30: memref<1x32xf32, #tpu.memory_space<vmem>>, %arg31: memref<1x32xf32, #tpu.memory_space<vmem>>, %arg32: memref<64x128xbf16, #tpu.memory_space<vmem>>, %arg33: memref<32x128xbf16, #tpu.memory_space<vmem>>, %arg34: memref<64x128xbf16, #tpu.memory_space<vmem>>, %arg35: memref<32x128xbf16, #tpu.memory_space<vmem>>, %arg36: memref<1x128xf32, #tpu.memory_space<vmem>>, %arg37: memref<128x32xbf16, #tpu.memory_space<vmem>>, %arg38: memref<1x32xf32, #tpu.memory_space<vmem>>, %arg39: memref<32x8xbf16, #tpu.memory_space<vmem>>, %arg40: memref<1x8xf32, #tpu.memory_space<vmem>>, %arg41: memref<2x8xf32, #tpu.memory_space<vmem>>) attributes {dimension_semantics = [], scalar_prefetch = 0 : i64, scratch_operands = 0 : i64, tpu.core_type = #tpu.core_type<tc>} {
    %c0 = arith.constant 0 : index
    %c0_0 = arith.constant 0 : index
    %0 = vector.load %arg0[%c0, %c0_0] : memref<64x64xbf16, #tpu.memory_space<vmem>>, vector<64x64xbf16>
    %c0_1 = arith.constant 0 : index
    %c0_2 = arith.constant 0 : index
    %1 = vector.load %arg1[%c0_1, %c0_2] : memref<64x16xf32, #tpu.memory_space<vmem>>, vector<64x16xf32>
    %c0_3 = arith.constant 0 : index
    %c0_4 = arith.constant 0 : index
    %2 = vector.load %arg2[%c0_3, %c0_4] : memref<2x64xf32, #tpu.memory_space<vmem>>, vector<2x64xf32>
    %c0_5 = arith.constant 0 : index
    %c0_6 = arith.constant 0 : index
    %3 = vector.load %arg3[%c0_5, %c0_6] : memref<64x64xf32, #tpu.memory_space<vmem>>, vector<64x64xf32>
    %4 = tpu.iota {dimensions = array<i32: 1>} : vector<64x64xi32>
    %5 = arith.sitofp %4 : vector<64x64xi32> to vector<64x64xf32>
    %c0_7 = arith.constant 0 : index
    %c0_8 = arith.constant 0 : index
    %6 = vector.load %arg4[%c0_7, %c0_8] : memref<80x64xbf16, #tpu.memory_space<vmem>>, vector<80x64xbf16>
    %c0_9 = arith.constant 0 : index
    %c0_10 = arith.constant 0 : index
    %7 = vector.load %arg5[%c0_9, %c0_10] : memref<1x64xf32, #tpu.memory_space<vmem>>, vector<1x64xf32>
    %8 = arith.truncf %1 : vector<64x16xf32> to vector<64x16xbf16>
    %cst = arith.constant dense<0.000000e+00> : vector<64x16xf32>
    %9 = tpu.matmul %0, %8, %cst {dimension_numbers = #tpu.dot_dimension_numbers<[1], [0], [0], [1], [0, 0, 1, 1], [], []>} : vector<64x64xbf16>, vector<64x16xbf16>, vector<64x16xf32> -> vector<64x16xf32>
    %10 = arith.truncf %9 : vector<64x16xf32> to vector<64x16xbf16>
    %cst_11 = arith.constant dense<0.000000e+00> : vector<64x16xf32>
    %11 = tpu.matmul %0, %10, %cst_11 {dimension_numbers = #tpu.dot_dimension_numbers<[1], [0], [0], [1], [0, 0, 1, 1], [], []>} : vector<64x64xbf16>, vector<64x16xbf16>, vector<64x16xf32> -> vector<64x16xf32>
    %12 = arith.truncf %11 : vector<64x16xf32> to vector<64x16xbf16>
    %cst_12 = arith.constant dense<0.000000e+00> : vector<64x16xf32>
    %13 = tpu.matmul %0, %12, %cst_12 {dimension_numbers = #tpu.dot_dimension_numbers<[1], [0], [0], [1], [0, 0, 1, 1], [], []>} : vector<64x64xbf16>, vector<64x16xbf16>, vector<64x16xf32> -> vector<64x16xf32>
    %14 = arith.truncf %13 : vector<64x16xf32> to vector<64x16xbf16>
    %cst_13 = arith.constant dense<0.000000e+00> : vector<64x16xf32>
    %15 = tpu.matmul %0, %14, %cst_13 {dimension_numbers = #tpu.dot_dimension_numbers<[1], [0], [0], [1], [0, 0, 1, 1], [], []>} : vector<64x64xbf16>, vector<64x16xbf16>, vector<64x16xf32> -> vector<64x16xf32>
    %16 = tpu.concatenate %1, %9, %11, %13, %15 in 1 : vector<64x16xf32>, vector<64x16xf32>, vector<64x16xf32>, vector<64x16xf32>, vector<64x16xf32> -> vector<64x80xf32>
    %17 = arith.truncf %16 : vector<64x80xf32> to vector<64x80xbf16>
    %cst_14 = arith.constant dense<0.000000e+00> : vector<64x64xf32>
    %18 = tpu.matmul %17, %6, %cst_14 {dimension_numbers = #tpu.dot_dimension_numbers<[1], [0], [0], [1], [0, 0, 1, 1], [], []>} : vector<64x80xbf16>, vector<80x64xbf16>, vector<64x64xf32> -> vector<64x64xf32>
    %19 = vector.broadcast %7 : vector<1x64xf32> to vector<64x64xf32>
    %20 = arith.addf %18, %19 : vector<64x64xf32>
    %cst_15 = arith.constant 0.000000e+00 : f32
    %21 = vector.broadcast %cst_15 : f32 to vector<64x64xf32>
    %22 = arith.maximumf %20, %21 : vector<64x64xf32>
    %c0_16 = arith.constant 0 : index
    %c0_17 = arith.constant 0 : index
    %23 = vector.load %arg6[%c0_16, %c0_17] : memref<320x64xbf16, #tpu.memory_space<vmem>>, vector<320x64xbf16>
    %c0_18 = arith.constant 0 : index
    %c0_19 = arith.constant 0 : index
    %24 = vector.load %arg7[%c0_18, %c0_19] : memref<1x64xf32, #tpu.memory_space<vmem>>, vector<1x64xf32>
    %25 = arith.truncf %22 : vector<64x64xf32> to vector<64x64xbf16>
    %cst_20 = arith.constant dense<0.000000e+00> : vector<64x64xf32>
    %26 = tpu.matmul %0, %25, %cst_20 {dimension_numbers = #tpu.dot_dimension_numbers<[1], [0], [0], [1], [0, 0, 1, 1], [], []>} : vector<64x64xbf16>, vector<64x64xbf16>, vector<64x64xf32> -> vector<64x64xf32>
    %27 = arith.truncf %26 : vector<64x64xf32> to vector<64x64xbf16>
    %cst_21 = arith.constant dense<0.000000e+00> : vector<64x64xf32>
    %28 = tpu.matmul %0, %27, %cst_21 {dimension_numbers = #tpu.dot_dimension_numbers<[1], [0], [0], [1], [0, 0, 1, 1], [], []>} : vector<64x64xbf16>, vector<64x64xbf16>, vector<64x64xf32> -> vector<64x64xf32>
    %29 = arith.truncf %28 : vector<64x64xf32> to vector<64x64xbf16>
    %cst_22 = arith.constant dense<0.000000e+00> : vector<64x64xf32>
    %30 = tpu.matmul %0, %29, %cst_22 {dimension_numbers = #tpu.dot_dimension_numbers<[1], [0], [0], [1], [0, 0, 1, 1], [], []>} : vector<64x64xbf16>, vector<64x64xbf16>, vector<64x64xf32> -> vector<64x64xf32>
    %31 = arith.truncf %30 : vector<64x64xf32> to vector<64x64xbf16>
    %cst_23 = arith.constant dense<0.000000e+00> : vector<64x64xf32>
    %32 = tpu.matmul %0, %31, %cst_23 {dimension_numbers = #tpu.dot_dimension_numbers<[1], [0], [0], [1], [0, 0, 1, 1], [], []>} : vector<64x64xbf16>, vector<64x64xbf16>, vector<64x64xf32> -> vector<64x64xf32>
    %33 = tpu.concatenate %22, %26, %28, %30, %32 in 1 : vector<64x64xf32>, vector<64x64xf32>, vector<64x64xf32>, vector<64x64xf32>, vector<64x64xf32> -> vector<64x320xf32>
    %34 = arith.truncf %33 : vector<64x320xf32> to vector<64x320xbf16>
    %cst_24 = arith.constant dense<0.000000e+00> : vector<64x64xf32>
    %35 = tpu.matmul %34, %23, %cst_24 {dimension_numbers = #tpu.dot_dimension_numbers<[1], [0], [0], [1], [0, 0, 1, 1], [], []>} : vector<64x320xbf16>, vector<320x64xbf16>, vector<64x64xf32> -> vector<64x64xf32>
    %36 = vector.broadcast %24 : vector<1x64xf32> to vector<64x64xf32>
    %37 = arith.addf %35, %36 : vector<64x64xf32>
    %cst_25 = arith.constant 0.000000e+00 : f32
    %38 = vector.broadcast %cst_25 : f32 to vector<64x64xf32>
    %39 = arith.maximumf %37, %38 : vector<64x64xf32>
    %c0_26 = arith.constant 0 : index
    %c0_27 = arith.constant 0 : index
    %40 = vector.load %arg8[%c0_26, %c0_27] : memref<1x64xf32, #tpu.memory_space<vmem>>, vector<1x64xf32>
    %41 = vector.broadcast %40 : vector<1x64xf32> to vector<64x64xf32>
    %42 = arith.mulf %39, %41 : vector<64x64xf32>
    %c0_28 = arith.constant 0 : index
    %c0_29 = arith.constant 0 : index
    %43 = vector.load %arg9[%c0_28, %c0_29] : memref<1x64xf32, #tpu.memory_space<vmem>>, vector<1x64xf32>
    %44 = vector.broadcast %43 : vector<1x64xf32> to vector<64x64xf32>
    %45 = arith.addf %42, %44 : vector<64x64xf32>
    %46 = vector.shape_cast %2 : vector<2x64xf32> to vector<2x64x1xf32>
    %cst_30 = arith.constant 5.000000e-01 : f32
    %47 = vector.broadcast %cst_30 : f32 to vector<2x64x1xf32>
    %48 = arith.cmpf ogt, %46, %47 : vector<2x64x1xf32>
    %49 = vector.shape_cast %45 : vector<64x64xf32> to vector<1x64x64xf32>
    %cst_31 = arith.constant -1.000000e+30 : f32
    %50 = vector.shape_cast %48 : vector<2x64x1xi1> to vector<2x64x1xi1>
    %51 = vector.broadcast %50 : vector<2x64x1xi1> to vector<2x64x64xi1>
    %52 = vector.shape_cast %49 : vector<1x64x64xf32> to vector<1x64x64xf32>
    %53 = vector.broadcast %52 : vector<1x64x64xf32> to vector<2x64x64xf32>
    %54 = vector.broadcast %cst_31 : f32 to vector<2x64x64xf32>
    %55 = arith.select %51, %53, %54 : vector<2x64x64xi1>, vector<2x64x64xf32>
    %cst_32 = arith.constant dense<0xFF800000> : vector<2x64xf32>
    %56 = vector.multi_reduction <maximumf>, %55, %cst_32 [1] : vector<2x64x64xf32> to vector<2x64xf32>
    %c0_33 = arith.constant 0 : index
    %c0_34 = arith.constant 0 : index
    %57 = vector.load %arg10[%c0_33, %c0_34] : memref<256x64xbf16, #tpu.memory_space<vmem>>, vector<256x64xbf16>
    %c0_35 = arith.constant 0 : index
    %c0_36 = arith.constant 0 : index
    %58 = vector.load %arg11[%c0_35, %c0_36] : memref<1x64xf32, #tpu.memory_space<vmem>>, vector<1x64xf32>
    %59 = arith.truncf %45 : vector<64x64xf32> to vector<64x64xbf16>
    %cst_37 = arith.constant dense<0.000000e+00> : vector<64x64xf32>
    %60 = tpu.matmul %0, %59, %cst_37 {dimension_numbers = #tpu.dot_dimension_numbers<[1], [0], [0], [1], [0, 0, 1, 1], [], []>} : vector<64x64xbf16>, vector<64x64xbf16>, vector<64x64xf32> -> vector<64x64xf32>
    %61 = arith.truncf %60 : vector<64x64xf32> to vector<64x64xbf16>
    %cst_38 = arith.constant dense<0.000000e+00> : vector<64x64xf32>
    %62 = tpu.matmul %0, %61, %cst_38 {dimension_numbers = #tpu.dot_dimension_numbers<[1], [0], [0], [1], [0, 0, 1, 1], [], []>} : vector<64x64xbf16>, vector<64x64xbf16>, vector<64x64xf32> -> vector<64x64xf32>
    %63 = arith.truncf %62 : vector<64x64xf32> to vector<64x64xbf16>
    %cst_39 = arith.constant dense<0.000000e+00> : vector<64x64xf32>
    %64 = tpu.matmul %0, %63, %cst_39 {dimension_numbers = #tpu.dot_dimension_numbers<[1], [0], [0], [1], [0, 0, 1, 1], [], []>} : vector<64x64xbf16>, vector<64x64xbf16>, vector<64x64xf32> -> vector<64x64xf32>
    %65 = tpu.concatenate %45, %60, %62, %64 in 1 : vector<64x64xf32>, vector<64x64xf32>, vector<64x64xf32>, vector<64x64xf32> -> vector<64x256xf32>
    %66 = arith.truncf %65 : vector<64x256xf32> to vector<64x256xbf16>
    %cst_40 = arith.constant dense<0.000000e+00> : vector<64x64xf32>
    %67 = tpu.matmul %66, %57, %cst_40 {dimension_numbers = #tpu.dot_dimension_numbers<[1], [0], [0], [1], [0, 0, 1, 1], [], []>} : vector<64x256xbf16>, vector<256x64xbf16>, vector<64x64xf32> -> vector<64x64xf32>
    %68 = vector.broadcast %58 : vector<1x64xf32> to vector<64x64xf32>
    %69 = arith.addf %67, %68 : vector<64x64xf32>
    %cst_41 = arith.constant 0.000000e+00 : f32
    %70 = vector.broadcast %cst_41 : f32 to vector<64x64xf32>
    %71 = arith.maximumf %69, %70 : vector<64x64xf32>
    %c0_42 = arith.constant 0 : index
    %c0_43 = arith.constant 0 : index
    %72 = vector.load %arg12[%c0_42, %c0_43] : memref<256x32xbf16, #tpu.memory_space<vmem>>, vector<256x32xbf16>
    %c0_44 = arith.constant 0 : index
    %c0_45 = arith.constant 0 : index
    %73 = vector.load %arg13[%c0_44, %c0_45] : memref<1x32xf32, #tpu.memory_space<vmem>>, vector<1x32xf32>
    %74 = arith.truncf %71 : vector<64x64xf32> to vector<64x64xbf16>
    %cst_46 = arith.constant dense<0.000000e+00> : vector<64x64xf32>
    %75 = tpu.matmul %0, %74, %cst_46 {dimension_numbers = #tpu.dot_dimension_numbers<[1], [0], [0], [1], [0, 0, 1, 1], [], []>} : vector<64x64xbf16>, vector<64x64xbf16>, vector<64x64xf32> -> vector<64x64xf32>
    %76 = arith.truncf %75 : vector<64x64xf32> to vector<64x64xbf16>
    %cst_47 = arith.constant dense<0.000000e+00> : vector<64x64xf32>
    %77 = tpu.matmul %0, %76, %cst_47 {dimension_numbers = #tpu.dot_dimension_numbers<[1], [0], [0], [1], [0, 0, 1, 1], [], []>} : vector<64x64xbf16>, vector<64x64xbf16>, vector<64x64xf32> -> vector<64x64xf32>
    %78 = arith.truncf %77 : vector<64x64xf32> to vector<64x64xbf16>
    %cst_48 = arith.constant dense<0.000000e+00> : vector<64x64xf32>
    %79 = tpu.matmul %0, %78, %cst_48 {dimension_numbers = #tpu.dot_dimension_numbers<[1], [0], [0], [1], [0, 0, 1, 1], [], []>} : vector<64x64xbf16>, vector<64x64xbf16>, vector<64x64xf32> -> vector<64x64xf32>
    %80 = tpu.concatenate %71, %75, %77, %79 in 1 : vector<64x64xf32>, vector<64x64xf32>, vector<64x64xf32>, vector<64x64xf32> -> vector<64x256xf32>
    %81 = arith.truncf %80 : vector<64x256xf32> to vector<64x256xbf16>
    %cst_49 = arith.constant dense<0.000000e+00> : vector<64x32xf32>
    %82 = tpu.matmul %81, %72, %cst_49 {dimension_numbers = #tpu.dot_dimension_numbers<[1], [0], [0], [1], [0, 0, 1, 1], [], []>} : vector<64x256xbf16>, vector<256x32xbf16>, vector<64x32xf32> -> vector<64x32xf32>
    %83 = vector.broadcast %73 : vector<1x32xf32> to vector<64x32xf32>
    %84 = arith.addf %82, %83 : vector<64x32xf32>
    %cst_50 = arith.constant 0.000000e+00 : f32
    %85 = vector.broadcast %cst_50 : f32 to vector<64x32xf32>
    %86 = arith.maximumf %84, %85 : vector<64x32xf32>
    %c0_51 = arith.constant 0 : index
    %c0_52 = arith.constant 0 : index
    %87 = vector.load %arg14[%c0_51, %c0_52] : memref<1x32xf32, #tpu.memory_space<vmem>>, vector<1x32xf32>
    %88 = vector.broadcast %87 : vector<1x32xf32> to vector<64x32xf32>
    %89 = arith.mulf %86, %88 : vector<64x32xf32>
    %c0_53 = arith.constant 0 : index
    %c0_54 = arith.constant 0 : index
    %90 = vector.load %arg15[%c0_53, %c0_54] : memref<1x32xf32, #tpu.memory_space<vmem>>, vector<1x32xf32>
    %91 = vector.broadcast %90 : vector<1x32xf32> to vector<64x32xf32>
    %92 = arith.addf %89, %91 : vector<64x32xf32>
    %93 = vector.shape_cast %2 : vector<2x64xf32> to vector<2x64x1xf32>
    %cst_55 = arith.constant 5.000000e-01 : f32
    %94 = vector.broadcast %cst_55 : f32 to vector<2x64x1xf32>
    %95 = arith.cmpf ogt, %93, %94 : vector<2x64x1xf32>
    %96 = vector.shape_cast %92 : vector<64x32xf32> to vector<1x64x32xf32>
    %cst_56 = arith.constant -1.000000e+30 : f32
    %97 = vector.shape_cast %95 : vector<2x64x1xi1> to vector<2x64x1xi1>
    %98 = vector.broadcast %97 : vector<2x64x1xi1> to vector<2x64x32xi1>
    %99 = vector.shape_cast %96 : vector<1x64x32xf32> to vector<1x64x32xf32>
    %100 = vector.broadcast %99 : vector<1x64x32xf32> to vector<2x64x32xf32>
    %101 = vector.broadcast %cst_56 : f32 to vector<2x64x32xf32>
    %102 = arith.select %98, %100, %101 : vector<2x64x32xi1>, vector<2x64x32xf32>
    %cst_57 = arith.constant dense<0xFF800000> : vector<2x32xf32>
    %103 = vector.multi_reduction <maximumf>, %102, %cst_57 [1] : vector<2x64x32xf32> to vector<2x32xf32>
    %c0_58 = arith.constant 0 : index
    %c0_59 = arith.constant 0 : index
    %104 = vector.load %arg16[%c0_58, %c0_59] : memref<32x64xbf16, #tpu.memory_space<vmem>>, vector<32x64xbf16>
    %c0_60 = arith.constant 0 : index
    %c0_61 = arith.constant 0 : index
    %105 = vector.load %arg17[%c0_60, %c0_61] : memref<32x64xbf16, #tpu.memory_space<vmem>>, vector<32x64xbf16>
    %c0_62 = arith.constant 0 : index
    %c0_63 = arith.constant 0 : index
    %106 = vector.load %arg18[%c0_62, %c0_63] : memref<1x64xf32, #tpu.memory_space<vmem>>, vector<1x64xf32>
    %cst_64 = arith.constant dense<0.000000e+00> : vector<64x64xf32>
    %107 = tpu.matmul %92, %92, %cst_64 {dimension_numbers = #tpu.dot_dimension_numbers<[1], [1], [0], [0], [0, 0, 1, 0], [], []>} : vector<64x32xf32>, vector<64x32xf32>, vector<64x64xf32> -> vector<64x64xf32>
    %cst_65 = arith.constant 1.000000e+00 : f32
    %108 = vector.broadcast %cst_65 : f32 to vector<64x32xf32>
    %109 = arith.mulf %92, %92 : vector<64x32xf32>
    %cst_66 = arith.constant dense<0.000000e+00> : vector<64x64xf32>
    %110 = tpu.matmul %108, %109, %cst_66 {dimension_numbers = #tpu.dot_dimension_numbers<[1], [1], [0], [0], [0, 0, 1, 0], [], []>} : vector<64x32xf32>, vector<64x32xf32>, vector<64x64xf32> -> vector<64x64xf32>
    %cst_67 = arith.constant 5.000000e-01 : f32
    %111 = vector.broadcast %cst_67 : f32 to vector<64x64xf32>
    %112 = arith.cmpf ogt, %3, %111 : vector<64x64xf32>
    %cst_68 = arith.constant 2.000000e+00 : f32
    %113 = vector.broadcast %cst_68 : f32 to vector<64x64xf32>
    %114 = arith.mulf %113, %107 : vector<64x64xf32>
    %115 = arith.subf %110, %114 : vector<64x64xf32>
    %cst_69 = arith.constant 1.000000e+30 : f32
    %116 = vector.broadcast %cst_69 : f32 to vector<64x64xf32>
    %117 = arith.select %112, %115, %116 : vector<64x64xi1>, vector<64x64xf32>
    %118 = arith.truncf %92 : vector<64x32xf32> to vector<64x32xbf16>
    %cst_70 = arith.constant dense<0.000000e+00> : vector<64x64xf32>
    %119 = tpu.matmul %118, %105, %cst_70 {dimension_numbers = #tpu.dot_dimension_numbers<[1], [0], [0], [1], [0, 0, 1, 1], [], []>} : vector<64x32xbf16>, vector<32x64xbf16>, vector<64x64xf32> -> vector<64x64xf32>
    %120 = arith.truncf %92 : vector<64x32xf32> to vector<64x32xbf16>
    %cst_71 = arith.constant dense<0.000000e+00> : vector<64x64xf32>
    %121 = tpu.matmul %120, %104, %cst_71 {dimension_numbers = #tpu.dot_dimension_numbers<[1], [0], [0], [1], [0, 0, 1, 1], [], []>} : vector<64x32xbf16>, vector<32x64xbf16>, vector<64x64xf32> -> vector<64x64xf32>
    %122 = vector.broadcast %106 : vector<1x64xf32> to vector<64x64xf32>
    %123 = arith.addf %121, %122 : vector<64x64xf32>
    %cst_72 = arith.constant -1.000000e+30 : f32
    %124 = vector.broadcast %cst_72 : f32 to vector<64x64xf32>
    %cst_73 = arith.constant dense<0x7F800000> : vector<64xf32>
    %125 = vector.multi_reduction <minimumf>, %117, %cst_73 [1] : vector<64x64xf32> to vector<64xf32>
    %126 = vector.shape_cast %125 : vector<64xf32> to vector<64x1xf32>
    %127 = vector.broadcast %126 : vector<64x1xf32> to vector<64x64xf32>
    %128 = arith.cmpf ole, %117, %127 : vector<64x64xf32>
    %cst_74 = arith.constant 6.400000e+01 : f32
    %129 = vector.broadcast %cst_74 : f32 to vector<64x64xf32>
    %130 = arith.select %128, %5, %129 : vector<64x64xi1>, vector<64x64xf32>
    %cst_75 = arith.constant dense<0x7F800000> : vector<64xf32>
    %131 = vector.multi_reduction <minimumf>, %130, %cst_75 [1] : vector<64x64xf32> to vector<64xf32>
    %132 = vector.shape_cast %131 : vector<64xf32> to vector<64x1xf32>
    %133 = vector.broadcast %132 : vector<64x1xf32> to vector<64x64xf32>
    %134 = arith.cmpf oeq, %5, %133 : vector<64x64xf32>
    %135 = arith.extui %134 : vector<64x64xi1> to vector<64x64xi32>
    %136 = arith.sitofp %135 : vector<64x64xi32> to vector<64x64xf32>
    %cst_76 = arith.constant dense<0.000000e+00> : vector<64x64xf32>
    %137 = tpu.matmul %136, %119, %cst_76 {dimension_numbers = #tpu.dot_dimension_numbers<[1], [0], [0], [1], [0, 0, 1, 1], [], []>} : vector<64x64xf32>, vector<64x64xf32>, vector<64x64xf32> -> vector<64x64xf32>
    %138 = arith.maximumf %124, %137 : vector<64x64xf32>
    %cst_77 = arith.constant 5.000000e-01 : f32
    %139 = vector.broadcast %cst_77 : f32 to vector<64x64xf32>
    %140 = arith.cmpf ogt, %136, %139 : vector<64x64xf32>
    %cst_78 = arith.constant 1.000000e+30 : f32
    %141 = vector.broadcast %cst_78 : f32 to vector<64x64xf32>
    %142 = arith.select %140, %141, %117 : vector<64x64xi1>, vector<64x64xf32>
    %cst_79 = arith.constant dense<0x7F800000> : vector<64xf32>
    %143 = vector.multi_reduction <minimumf>, %142, %cst_79 [1] : vector<64x64xf32> to vector<64xf32>
    %144 = vector.shape_cast %143 : vector<64xf32> to vector<64x1xf32>
    %145 = vector.broadcast %144 : vector<64x1xf32> to vector<64x64xf32>
    %146 = arith.cmpf ole, %142, %145 : vector<64x64xf32>
    %cst_80 = arith.constant 6.400000e+01 : f32
    %147 = vector.broadcast %cst_80 : f32 to vector<64x64xf32>
    %148 = arith.select %146, %5, %147 : vector<64x64xi1>, vector<64x64xf32>
    %cst_81 = arith.constant dense<0x7F800000> : vector<64xf32>
    %149 = vector.multi_reduction <minimumf>, %148, %cst_81 [1] : vector<64x64xf32> to vector<64xf32>
    %150 = vector.shape_cast %149 : vector<64xf32> to vector<64x1xf32>
    %151 = vector.broadcast %150 : vector<64x1xf32> to vector<64x64xf32>
    %152 = arith.cmpf oeq, %5, %151 : vector<64x64xf32>
    %153 = arith.extui %152 : vector<64x64xi1> to vector<64x64xi32>
    %154 = arith.sitofp %153 : vector<64x64xi32> to vector<64x64xf32>
    %cst_82 = arith.constant dense<0.000000e+00> : vector<64x64xf32>
    %155 = tpu.matmul %154, %119, %cst_82 {dimension_numbers = #tpu.dot_dimension_numbers<[1], [0], [0], [1], [0, 0, 1, 1], [], []>} : vector<64x64xf32>, vector<64x64xf32>, vector<64x64xf32> -> vector<64x64xf32>
    %156 = arith.maximumf %138, %155 : vector<64x64xf32>
    %cst_83 = arith.constant 5.000000e-01 : f32
    %157 = vector.broadcast %cst_83 : f32 to vector<64x64xf32>
    %158 = arith.cmpf ogt, %154, %157 : vector<64x64xf32>
    %cst_84 = arith.constant 1.000000e+30 : f32
    %159 = vector.broadcast %cst_84 : f32 to vector<64x64xf32>
    %160 = arith.select %158, %159, %142 : vector<64x64xi1>, vector<64x64xf32>
    %cst_85 = arith.constant dense<0x7F800000> : vector<64xf32>
    %161 = vector.multi_reduction <minimumf>, %160, %cst_85 [1] : vector<64x64xf32> to vector<64xf32>
    %162 = vector.shape_cast %161 : vector<64xf32> to vector<64x1xf32>
    %163 = vector.broadcast %162 : vector<64x1xf32> to vector<64x64xf32>
    %164 = arith.cmpf ole, %160, %163 : vector<64x64xf32>
    %cst_86 = arith.constant 6.400000e+01 : f32
    %165 = vector.broadcast %cst_86 : f32 to vector<64x64xf32>
    %166 = arith.select %164, %5, %165 : vector<64x64xi1>, vector<64x64xf32>
    %cst_87 = arith.constant dense<0x7F800000> : vector<64xf32>
    %167 = vector.multi_reduction <minimumf>, %166, %cst_87 [1] : vector<64x64xf32> to vector<64xf32>
    %168 = vector.shape_cast %167 : vector<64xf32> to vector<64x1xf32>
    %169 = vector.broadcast %168 : vector<64x1xf32> to vector<64x64xf32>
    %170 = arith.cmpf oeq, %5, %169 : vector<64x64xf32>
    %171 = arith.extui %170 : vector<64x64xi1> to vector<64x64xi32>
    %172 = arith.sitofp %171 : vector<64x64xi32> to vector<64x64xf32>
    %cst_88 = arith.constant dense<0.000000e+00> : vector<64x64xf32>
    %173 = tpu.matmul %172, %119, %cst_88 {dimension_numbers = #tpu.dot_dimension_numbers<[1], [0], [0], [1], [0, 0, 1, 1], [], []>} : vector<64x64xf32>, vector<64x64xf32>, vector<64x64xf32> -> vector<64x64xf32>
    %174 = arith.maximumf %156, %173 : vector<64x64xf32>
    %cst_89 = arith.constant 5.000000e-01 : f32
    %175 = vector.broadcast %cst_89 : f32 to vector<64x64xf32>
    %176 = arith.cmpf ogt, %172, %175 : vector<64x64xf32>
    %cst_90 = arith.constant 1.000000e+30 : f32
    %177 = vector.broadcast %cst_90 : f32 to vector<64x64xf32>
    %178 = arith.select %176, %177, %160 : vector<64x64xi1>, vector<64x64xf32>
    %cst_91 = arith.constant dense<0x7F800000> : vector<64xf32>
    %179 = vector.multi_reduction <minimumf>, %178, %cst_91 [1] : vector<64x64xf32> to vector<64xf32>
    %180 = vector.shape_cast %179 : vector<64xf32> to vector<64x1xf32>
    %181 = vector.broadcast %180 : vector<64x1xf32> to vector<64x64xf32>
    %182 = arith.cmpf ole, %178, %181 : vector<64x64xf32>
    %cst_92 = arith.constant 6.400000e+01 : f32
    %183 = vector.broadcast %cst_92 : f32 to vector<64x64xf32>
    %184 = arith.select %182, %5, %183 : vector<64x64xi1>, vector<64x64xf32>
    %cst_93 = arith.constant dense<0x7F800000> : vector<64xf32>
    %185 = vector.multi_reduction <minimumf>, %184, %cst_93 [1] : vector<64x64xf32> to vector<64xf32>
    %186 = vector.shape_cast %185 : vector<64xf32> to vector<64x1xf32>
    %187 = vector.broadcast %186 : vector<64x1xf32> to vector<64x64xf32>
    %188 = arith.cmpf oeq, %5, %187 : vector<64x64xf32>
    %189 = arith.extui %188 : vector<64x64xi1> to vector<64x64xi32>
    %190 = arith.sitofp %189 : vector<64x64xi32> to vector<64x64xf32>
    %cst_94 = arith.constant dense<0.000000e+00> : vector<64x64xf32>
    %191 = tpu.matmul %190, %119, %cst_94 {dimension_numbers = #tpu.dot_dimension_numbers<[1], [0], [0], [1], [0, 0, 1, 1], [], []>} : vector<64x64xf32>, vector<64x64xf32>, vector<64x64xf32> -> vector<64x64xf32>
    %192 = arith.maximumf %174, %191 : vector<64x64xf32>
    %193 = arith.addf %123, %192 : vector<64x64xf32>
    %c0_95 = arith.constant 0 : index
    %c0_96 = arith.constant 0 : index
    %194 = vector.load %arg19[%c0_95, %c0_96] : memref<64x64xbf16, #tpu.memory_space<vmem>>, vector<64x64xbf16>
    %c0_97 = arith.constant 0 : index
    %c0_98 = arith.constant 0 : index
    %195 = vector.load %arg20[%c0_97, %c0_98] : memref<64x64xbf16, #tpu.memory_space<vmem>>, vector<64x64xbf16>
    %c0_99 = arith.constant 0 : index
    %c0_100 = arith.constant 0 : index
    %196 = vector.load %arg21[%c0_99, %c0_100] : memref<1x64xf32, #tpu.memory_space<vmem>>, vector<1x64xf32>
    %cst_101 = arith.constant dense<0.000000e+00> : vector<64x64xf32>
    %197 = tpu.matmul %193, %193, %cst_101 {dimension_numbers = #tpu.dot_dimension_numbers<[1], [1], [0], [0], [0, 0, 1, 0], [], []>} : vector<64x64xf32>, vector<64x64xf32>, vector<64x64xf32> -> vector<64x64xf32>
    %cst_102 = arith.constant 1.000000e+00 : f32
    %198 = vector.broadcast %cst_102 : f32 to vector<64x64xf32>
    %199 = arith.mulf %193, %193 : vector<64x64xf32>
    %cst_103 = arith.constant dense<0.000000e+00> : vector<64x64xf32>
    %200 = tpu.matmul %198, %199, %cst_103 {dimension_numbers = #tpu.dot_dimension_numbers<[1], [1], [0], [0], [0, 0, 1, 0], [], []>} : vector<64x64xf32>, vector<64x64xf32>, vector<64x64xf32> -> vector<64x64xf32>
    %cst_104 = arith.constant 5.000000e-01 : f32
    %201 = vector.broadcast %cst_104 : f32 to vector<64x64xf32>
    %202 = arith.cmpf ogt, %3, %201 : vector<64x64xf32>
    %cst_105 = arith.constant 2.000000e+00 : f32
    %203 = vector.broadcast %cst_105 : f32 to vector<64x64xf32>
    %204 = arith.mulf %203, %197 : vector<64x64xf32>
    %205 = arith.subf %200, %204 : vector<64x64xf32>
    %cst_106 = arith.constant 1.000000e+30 : f32
    %206 = vector.broadcast %cst_106 : f32 to vector<64x64xf32>
    %207 = arith.select %202, %205, %206 : vector<64x64xi1>, vector<64x64xf32>
    %208 = arith.truncf %193 : vector<64x64xf32> to vector<64x64xbf16>
    %cst_107 = arith.constant dense<0.000000e+00> : vector<64x64xf32>
    %209 = tpu.matmul %208, %195, %cst_107 {dimension_numbers = #tpu.dot_dimension_numbers<[1], [0], [0], [1], [0, 0, 1, 1], [], []>} : vector<64x64xbf16>, vector<64x64xbf16>, vector<64x64xf32> -> vector<64x64xf32>
    %210 = arith.truncf %193 : vector<64x64xf32> to vector<64x64xbf16>
    %cst_108 = arith.constant dense<0.000000e+00> : vector<64x64xf32>
    %211 = tpu.matmul %210, %194, %cst_108 {dimension_numbers = #tpu.dot_dimension_numbers<[1], [0], [0], [1], [0, 0, 1, 1], [], []>} : vector<64x64xbf16>, vector<64x64xbf16>, vector<64x64xf32> -> vector<64x64xf32>
    %212 = vector.broadcast %196 : vector<1x64xf32> to vector<64x64xf32>
    %213 = arith.addf %211, %212 : vector<64x64xf32>
    %cst_109 = arith.constant -1.000000e+30 : f32
    %214 = vector.broadcast %cst_109 : f32 to vector<64x64xf32>
    %cst_110 = arith.constant dense<0x7F800000> : vector<64xf32>
    %215 = vector.multi_reduction <minimumf>, %207, %cst_110 [1] : vector<64x64xf32> to vector<64xf32>
    %216 = vector.shape_cast %215 : vector<64xf32> to vector<64x1xf32>
    %217 = vector.broadcast %216 : vector<64x1xf32> to vector<64x64xf32>
    %218 = arith.cmpf ole, %207, %217 : vector<64x64xf32>
    %cst_111 = arith.constant 6.400000e+01 : f32
    %219 = vector.broadcast %cst_111 : f32 to vector<64x64xf32>
    %220 = arith.select %218, %5, %219 : vector<64x64xi1>, vector<64x64xf32>
    %cst_112 = arith.constant dense<0x7F800000> : vector<64xf32>
    %221 = vector.multi_reduction <minimumf>, %220, %cst_112 [1] : vector<64x64xf32> to vector<64xf32>
    %222 = vector.shape_cast %221 : vector<64xf32> to vector<64x1xf32>
    %223 = vector.broadcast %222 : vector<64x1xf32> to vector<64x64xf32>
    %224 = arith.cmpf oeq, %5, %223 : vector<64x64xf32>
    %225 = arith.extui %224 : vector<64x64xi1> to vector<64x64xi32>
    %226 = arith.sitofp %225 : vector<64x64xi32> to vector<64x64xf32>
    %cst_113 = arith.constant dense<0.000000e+00> : vector<64x64xf32>
    %227 = tpu.matmul %226, %209, %cst_113 {dimension_numbers = #tpu.dot_dimension_numbers<[1], [0], [0], [1], [0, 0, 1, 1], [], []>} : vector<64x64xf32>, vector<64x64xf32>, vector<64x64xf32> -> vector<64x64xf32>
    %228 = arith.maximumf %214, %227 : vector<64x64xf32>
    %cst_114 = arith.constant 5.000000e-01 : f32
    %229 = vector.broadcast %cst_114 : f32 to vector<64x64xf32>
    %230 = arith.cmpf ogt, %226, %229 : vector<64x64xf32>
    %cst_115 = arith.constant 1.000000e+30 : f32
    %231 = vector.broadcast %cst_115 : f32 to vector<64x64xf32>
    %232 = arith.select %230, %231, %207 : vector<64x64xi1>, vector<64x64xf32>
    %cst_116 = arith.constant dense<0x7F800000> : vector<64xf32>
    %233 = vector.multi_reduction <minimumf>, %232, %cst_116 [1] : vector<64x64xf32> to vector<64xf32>
    %234 = vector.shape_cast %233 : vector<64xf32> to vector<64x1xf32>
    %235 = vector.broadcast %234 : vector<64x1xf32> to vector<64x64xf32>
    %236 = arith.cmpf ole, %232, %235 : vector<64x64xf32>
    %cst_117 = arith.constant 6.400000e+01 : f32
    %237 = vector.broadcast %cst_117 : f32 to vector<64x64xf32>
    %238 = arith.select %236, %5, %237 : vector<64x64xi1>, vector<64x64xf32>
    %cst_118 = arith.constant dense<0x7F800000> : vector<64xf32>
    %239 = vector.multi_reduction <minimumf>, %238, %cst_118 [1] : vector<64x64xf32> to vector<64xf32>
    %240 = vector.shape_cast %239 : vector<64xf32> to vector<64x1xf32>
    %241 = vector.broadcast %240 : vector<64x1xf32> to vector<64x64xf32>
    %242 = arith.cmpf oeq, %5, %241 : vector<64x64xf32>
    %243 = arith.extui %242 : vector<64x64xi1> to vector<64x64xi32>
    %244 = arith.sitofp %243 : vector<64x64xi32> to vector<64x64xf32>
    %cst_119 = arith.constant dense<0.000000e+00> : vector<64x64xf32>
    %245 = tpu.matmul %244, %209, %cst_119 {dimension_numbers = #tpu.dot_dimension_numbers<[1], [0], [0], [1], [0, 0, 1, 1], [], []>} : vector<64x64xf32>, vector<64x64xf32>, vector<64x64xf32> -> vector<64x64xf32>
    %246 = arith.maximumf %228, %245 : vector<64x64xf32>
    %cst_120 = arith.constant 5.000000e-01 : f32
    %247 = vector.broadcast %cst_120 : f32 to vector<64x64xf32>
    %248 = arith.cmpf ogt, %244, %247 : vector<64x64xf32>
    %cst_121 = arith.constant 1.000000e+30 : f32
    %249 = vector.broadcast %cst_121 : f32 to vector<64x64xf32>
    %250 = arith.select %248, %249, %232 : vector<64x64xi1>, vector<64x64xf32>
    %cst_122 = arith.constant dense<0x7F800000> : vector<64xf32>
    %251 = vector.multi_reduction <minimumf>, %250, %cst_122 [1] : vector<64x64xf32> to vector<64xf32>
    %252 = vector.shape_cast %251 : vector<64xf32> to vector<64x1xf32>
    %253 = vector.broadcast %252 : vector<64x1xf32> to vector<64x64xf32>
    %254 = arith.cmpf ole, %250, %253 : vector<64x64xf32>
    %cst_123 = arith.constant 6.400000e+01 : f32
    %255 = vector.broadcast %cst_123 : f32 to vector<64x64xf32>
    %256 = arith.select %254, %5, %255 : vector<64x64xi1>, vector<64x64xf32>
    %cst_124 = arith.constant dense<0x7F800000> : vector<64xf32>
    %257 = vector.multi_reduction <minimumf>, %256, %cst_124 [1] : vector<64x64xf32> to vector<64xf32>
    %258 = vector.shape_cast %257 : vector<64xf32> to vector<64x1xf32>
    %259 = vector.broadcast %258 : vector<64x1xf32> to vector<64x64xf32>
    %260 = arith.cmpf oeq, %5, %259 : vector<64x64xf32>
    %261 = arith.extui %260 : vector<64x64xi1> to vector<64x64xi32>
    %262 = arith.sitofp %261 : vector<64x64xi32> to vector<64x64xf32>
    %cst_125 = arith.constant dense<0.000000e+00> : vector<64x64xf32>
    %263 = tpu.matmul %262, %209, %cst_125 {dimension_numbers = #tpu.dot_dimension_numbers<[1], [0], [0], [1], [0, 0, 1, 1], [], []>} : vector<64x64xf32>, vector<64x64xf32>, vector<64x64xf32> -> vector<64x64xf32>
    %264 = arith.maximumf %246, %263 : vector<64x64xf32>
    %cst_126 = arith.constant 5.000000e-01 : f32
    %265 = vector.broadcast %cst_126 : f32 to vector<64x64xf32>
    %266 = arith.cmpf ogt, %262, %265 : vector<64x64xf32>
    %cst_127 = arith.constant 1.000000e+30 : f32
    %267 = vector.broadcast %cst_127 : f32 to vector<64x64xf32>
    %268 = arith.select %266, %267, %250 : vector<64x64xi1>, vector<64x64xf32>
    %cst_128 = arith.constant dense<0x7F800000> : vector<64xf32>
    %269 = vector.multi_reduction <minimumf>, %268, %cst_128 [1] : vector<64x64xf32> to vector<64xf32>
    %270 = vector.shape_cast %269 : vector<64xf32> to vector<64x1xf32>
    %271 = vector.broadcast %270 : vector<64x1xf32> to vector<64x64xf32>
    %272 = arith.cmpf ole, %268, %271 : vector<64x64xf32>
    %cst_129 = arith.constant 6.400000e+01 : f32
    %273 = vector.broadcast %cst_129 : f32 to vector<64x64xf32>
    %274 = arith.select %272, %5, %273 : vector<64x64xi1>, vector<64x64xf32>
    %cst_130 = arith.constant dense<0x7F800000> : vector<64xf32>
    %275 = vector.multi_reduction <minimumf>, %274, %cst_130 [1] : vector<64x64xf32> to vector<64xf32>
    %276 = vector.shape_cast %275 : vector<64xf32> to vector<64x1xf32>
    %277 = vector.broadcast %276 : vector<64x1xf32> to vector<64x64xf32>
    %278 = arith.cmpf oeq, %5, %277 : vector<64x64xf32>
    %279 = arith.extui %278 : vector<64x64xi1> to vector<64x64xi32>
    %280 = arith.sitofp %279 : vector<64x64xi32> to vector<64x64xf32>
    %cst_131 = arith.constant dense<0.000000e+00> : vector<64x64xf32>
    %281 = tpu.matmul %280, %209, %cst_131 {dimension_numbers = #tpu.dot_dimension_numbers<[1], [0], [0], [1], [0, 0, 1, 1], [], []>} : vector<64x64xf32>, vector<64x64xf32>, vector<64x64xf32> -> vector<64x64xf32>
    %282 = arith.maximumf %264, %281 : vector<64x64xf32>
    %283 = arith.addf %213, %282 : vector<64x64xf32>
    %c0_132 = arith.constant 0 : index
    %c0_133 = arith.constant 0 : index
    %284 = vector.load %arg22[%c0_132, %c0_133] : memref<1x64xf32, #tpu.memory_space<vmem>>, vector<1x64xf32>
    %285 = vector.broadcast %284 : vector<1x64xf32> to vector<64x64xf32>
    %286 = arith.mulf %283, %285 : vector<64x64xf32>
    %c0_134 = arith.constant 0 : index
    %c0_135 = arith.constant 0 : index
    %287 = vector.load %arg23[%c0_134, %c0_135] : memref<1x64xf32, #tpu.memory_space<vmem>>, vector<1x64xf32>
    %288 = vector.broadcast %287 : vector<1x64xf32> to vector<64x64xf32>
    %289 = arith.addf %286, %288 : vector<64x64xf32>
    %290 = vector.shape_cast %2 : vector<2x64xf32> to vector<2x64x1xf32>
    %cst_136 = arith.constant 5.000000e-01 : f32
    %291 = vector.broadcast %cst_136 : f32 to vector<2x64x1xf32>
    %292 = arith.cmpf ogt, %290, %291 : vector<2x64x1xf32>
    %293 = vector.shape_cast %289 : vector<64x64xf32> to vector<1x64x64xf32>
    %cst_137 = arith.constant -1.000000e+30 : f32
    %294 = vector.shape_cast %292 : vector<2x64x1xi1> to vector<2x64x1xi1>
    %295 = vector.broadcast %294 : vector<2x64x1xi1> to vector<2x64x64xi1>
    %296 = vector.shape_cast %293 : vector<1x64x64xf32> to vector<1x64x64xf32>
    %297 = vector.broadcast %296 : vector<1x64x64xf32> to vector<2x64x64xf32>
    %298 = vector.broadcast %cst_137 : f32 to vector<2x64x64xf32>
    %299 = arith.select %295, %297, %298 : vector<2x64x64xi1>, vector<2x64x64xf32>
    %cst_138 = arith.constant dense<0xFF800000> : vector<2x64xf32>
    %300 = vector.multi_reduction <maximumf>, %299, %cst_138 [1] : vector<2x64x64xf32> to vector<2x64xf32>
    %c0_139 = arith.constant 0 : index
    %c0_140 = arith.constant 0 : index
    %301 = vector.load %arg24[%c0_139, %c0_140] : memref<64x32xbf16, #tpu.memory_space<vmem>>, vector<64x32xbf16>
    %c0_141 = arith.constant 0 : index
    %c0_142 = arith.constant 0 : index
    %302 = vector.load %arg25[%c0_141, %c0_142] : memref<64x32xbf16, #tpu.memory_space<vmem>>, vector<64x32xbf16>
    %c0_143 = arith.constant 0 : index
    %c0_144 = arith.constant 0 : index
    %303 = vector.load %arg26[%c0_143, %c0_144] : memref<1x32xf32, #tpu.memory_space<vmem>>, vector<1x32xf32>
    %cst_145 = arith.constant dense<0.000000e+00> : vector<64x64xf32>
    %304 = tpu.matmul %289, %289, %cst_145 {dimension_numbers = #tpu.dot_dimension_numbers<[1], [1], [0], [0], [0, 0, 1, 0], [], []>} : vector<64x64xf32>, vector<64x64xf32>, vector<64x64xf32> -> vector<64x64xf32>
    %cst_146 = arith.constant 1.000000e+00 : f32
    %305 = vector.broadcast %cst_146 : f32 to vector<64x64xf32>
    %306 = arith.mulf %289, %289 : vector<64x64xf32>
    %cst_147 = arith.constant dense<0.000000e+00> : vector<64x64xf32>
    %307 = tpu.matmul %305, %306, %cst_147 {dimension_numbers = #tpu.dot_dimension_numbers<[1], [1], [0], [0], [0, 0, 1, 0], [], []>} : vector<64x64xf32>, vector<64x64xf32>, vector<64x64xf32> -> vector<64x64xf32>
    %cst_148 = arith.constant 5.000000e-01 : f32
    %308 = vector.broadcast %cst_148 : f32 to vector<64x64xf32>
    %309 = arith.cmpf ogt, %3, %308 : vector<64x64xf32>
    %cst_149 = arith.constant 2.000000e+00 : f32
    %310 = vector.broadcast %cst_149 : f32 to vector<64x64xf32>
    %311 = arith.mulf %310, %304 : vector<64x64xf32>
    %312 = arith.subf %307, %311 : vector<64x64xf32>
    %cst_150 = arith.constant 1.000000e+30 : f32
    %313 = vector.broadcast %cst_150 : f32 to vector<64x64xf32>
    %314 = arith.select %309, %312, %313 : vector<64x64xi1>, vector<64x64xf32>
    %315 = arith.truncf %289 : vector<64x64xf32> to vector<64x64xbf16>
    %cst_151 = arith.constant dense<0.000000e+00> : vector<64x32xf32>
    %316 = tpu.matmul %315, %302, %cst_151 {dimension_numbers = #tpu.dot_dimension_numbers<[1], [0], [0], [1], [0, 0, 1, 1], [], []>} : vector<64x64xbf16>, vector<64x32xbf16>, vector<64x32xf32> -> vector<64x32xf32>
    %317 = arith.truncf %289 : vector<64x64xf32> to vector<64x64xbf16>
    %cst_152 = arith.constant dense<0.000000e+00> : vector<64x32xf32>
    %318 = tpu.matmul %317, %301, %cst_152 {dimension_numbers = #tpu.dot_dimension_numbers<[1], [0], [0], [1], [0, 0, 1, 1], [], []>} : vector<64x64xbf16>, vector<64x32xbf16>, vector<64x32xf32> -> vector<64x32xf32>
    %319 = vector.broadcast %303 : vector<1x32xf32> to vector<64x32xf32>
    %320 = arith.addf %318, %319 : vector<64x32xf32>
    %cst_153 = arith.constant -1.000000e+30 : f32
    %321 = vector.broadcast %cst_153 : f32 to vector<64x32xf32>
    %cst_154 = arith.constant dense<0x7F800000> : vector<64xf32>
    %322 = vector.multi_reduction <minimumf>, %314, %cst_154 [1] : vector<64x64xf32> to vector<64xf32>
    %323 = vector.shape_cast %322 : vector<64xf32> to vector<64x1xf32>
    %324 = vector.broadcast %323 : vector<64x1xf32> to vector<64x64xf32>
    %325 = arith.cmpf ole, %314, %324 : vector<64x64xf32>
    %cst_155 = arith.constant 6.400000e+01 : f32
    %326 = vector.broadcast %cst_155 : f32 to vector<64x64xf32>
    %327 = arith.select %325, %5, %326 : vector<64x64xi1>, vector<64x64xf32>
    %cst_156 = arith.constant dense<0x7F800000> : vector<64xf32>
    %328 = vector.multi_reduction <minimumf>, %327, %cst_156 [1] : vector<64x64xf32> to vector<64xf32>
    %329 = vector.shape_cast %328 : vector<64xf32> to vector<64x1xf32>
    %330 = vector.broadcast %329 : vector<64x1xf32> to vector<64x64xf32>
    %331 = arith.cmpf oeq, %5, %330 : vector<64x64xf32>
    %332 = arith.extui %331 : vector<64x64xi1> to vector<64x64xi32>
    %333 = arith.sitofp %332 : vector<64x64xi32> to vector<64x64xf32>
    %cst_157 = arith.constant dense<0.000000e+00> : vector<64x32xf32>
    %334 = tpu.matmul %333, %316, %cst_157 {dimension_numbers = #tpu.dot_dimension_numbers<[1], [0], [0], [1], [0, 0, 1, 1], [], []>} : vector<64x64xf32>, vector<64x32xf32>, vector<64x32xf32> -> vector<64x32xf32>
    %335 = arith.maximumf %321, %334 : vector<64x32xf32>
    %cst_158 = arith.constant 5.000000e-01 : f32
    %336 = vector.broadcast %cst_158 : f32 to vector<64x64xf32>
    %337 = arith.cmpf ogt, %333, %336 : vector<64x64xf32>
    %cst_159 = arith.constant 1.000000e+30 : f32
    %338 = vector.broadcast %cst_159 : f32 to vector<64x64xf32>
    %339 = arith.select %337, %338, %314 : vector<64x64xi1>, vector<64x64xf32>
    %cst_160 = arith.constant dense<0x7F800000> : vector<64xf32>
    %340 = vector.multi_reduction <minimumf>, %339, %cst_160 [1] : vector<64x64xf32> to vector<64xf32>
    %341 = vector.shape_cast %340 : vector<64xf32> to vector<64x1xf32>
    %342 = vector.broadcast %341 : vector<64x1xf32> to vector<64x64xf32>
    %343 = arith.cmpf ole, %339, %342 : vector<64x64xf32>
    %cst_161 = arith.constant 6.400000e+01 : f32
    %344 = vector.broadcast %cst_161 : f32 to vector<64x64xf32>
    %345 = arith.select %343, %5, %344 : vector<64x64xi1>, vector<64x64xf32>
    %cst_162 = arith.constant dense<0x7F800000> : vector<64xf32>
    %346 = vector.multi_reduction <minimumf>, %345, %cst_162 [1] : vector<64x64xf32> to vector<64xf32>
    %347 = vector.shape_cast %346 : vector<64xf32> to vector<64x1xf32>
    %348 = vector.broadcast %347 : vector<64x1xf32> to vector<64x64xf32>
    %349 = arith.cmpf oeq, %5, %348 : vector<64x64xf32>
    %350 = arith.extui %349 : vector<64x64xi1> to vector<64x64xi32>
    %351 = arith.sitofp %350 : vector<64x64xi32> to vector<64x64xf32>
    %cst_163 = arith.constant dense<0.000000e+00> : vector<64x32xf32>
    %352 = tpu.matmul %351, %316, %cst_163 {dimension_numbers = #tpu.dot_dimension_numbers<[1], [0], [0], [1], [0, 0, 1, 1], [], []>} : vector<64x64xf32>, vector<64x32xf32>, vector<64x32xf32> -> vector<64x32xf32>
    %353 = arith.maximumf %335, %352 : vector<64x32xf32>
    %cst_164 = arith.constant 5.000000e-01 : f32
    %354 = vector.broadcast %cst_164 : f32 to vector<64x64xf32>
    %355 = arith.cmpf ogt, %351, %354 : vector<64x64xf32>
    %cst_165 = arith.constant 1.000000e+30 : f32
    %356 = vector.broadcast %cst_165 : f32 to vector<64x64xf32>
    %357 = arith.select %355, %356, %339 : vector<64x64xi1>, vector<64x64xf32>
    %cst_166 = arith.constant dense<0x7F800000> : vector<64xf32>
    %358 = vector.multi_reduction <minimumf>, %357, %cst_166 [1] : vector<64x64xf32> to vector<64xf32>
    %359 = vector.shape_cast %358 : vector<64xf32> to vector<64x1xf32>
    %360 = vector.broadcast %359 : vector<64x1xf32> to vector<64x64xf32>
    %361 = arith.cmpf ole, %357, %360 : vector<64x64xf32>
    %cst_167 = arith.constant 6.400000e+01 : f32
    %362 = vector.broadcast %cst_167 : f32 to vector<64x64xf32>
    %363 = arith.select %361, %5, %362 : vector<64x64xi1>, vector<64x64xf32>
    %cst_168 = arith.constant dense<0x7F800000> : vector<64xf32>
    %364 = vector.multi_reduction <minimumf>, %363, %cst_168 [1] : vector<64x64xf32> to vector<64xf32>
    %365 = vector.shape_cast %364 : vector<64xf32> to vector<64x1xf32>
    %366 = vector.broadcast %365 : vector<64x1xf32> to vector<64x64xf32>
    %367 = arith.cmpf oeq, %5, %366 : vector<64x64xf32>
    %368 = arith.extui %367 : vector<64x64xi1> to vector<64x64xi32>
    %369 = arith.sitofp %368 : vector<64x64xi32> to vector<64x64xf32>
    %cst_169 = arith.constant dense<0.000000e+00> : vector<64x32xf32>
    %370 = tpu.matmul %369, %316, %cst_169 {dimension_numbers = #tpu.dot_dimension_numbers<[1], [0], [0], [1], [0, 0, 1, 1], [], []>} : vector<64x64xf32>, vector<64x32xf32>, vector<64x32xf32> -> vector<64x32xf32>
    %371 = arith.maximumf %353, %370 : vector<64x32xf32>
    %cst_170 = arith.constant 5.000000e-01 : f32
    %372 = vector.broadcast %cst_170 : f32 to vector<64x64xf32>
    %373 = arith.cmpf ogt, %369, %372 : vector<64x64xf32>
    %cst_171 = arith.constant 1.000000e+30 : f32
    %374 = vector.broadcast %cst_171 : f32 to vector<64x64xf32>
    %375 = arith.select %373, %374, %357 : vector<64x64xi1>, vector<64x64xf32>
    %cst_172 = arith.constant dense<0x7F800000> : vector<64xf32>
    %376 = vector.multi_reduction <minimumf>, %375, %cst_172 [1] : vector<64x64xf32> to vector<64xf32>
    %377 = vector.shape_cast %376 : vector<64xf32> to vector<64x1xf32>
    %378 = vector.broadcast %377 : vector<64x1xf32> to vector<64x64xf32>
    %379 = arith.cmpf ole, %375, %378 : vector<64x64xf32>
    %cst_173 = arith.constant 6.400000e+01 : f32
    %380 = vector.broadcast %cst_173 : f32 to vector<64x64xf32>
    %381 = arith.select %379, %5, %380 : vector<64x64xi1>, vector<64x64xf32>
    %cst_174 = arith.constant dense<0x7F800000> : vector<64xf32>
    %382 = vector.multi_reduction <minimumf>, %381, %cst_174 [1] : vector<64x64xf32> to vector<64xf32>
    %383 = vector.shape_cast %382 : vector<64xf32> to vector<64x1xf32>
    %384 = vector.broadcast %383 : vector<64x1xf32> to vector<64x64xf32>
    %385 = arith.cmpf oeq, %5, %384 : vector<64x64xf32>
    %386 = arith.extui %385 : vector<64x64xi1> to vector<64x64xi32>
    %387 = arith.sitofp %386 : vector<64x64xi32> to vector<64x64xf32>
    %cst_175 = arith.constant dense<0.000000e+00> : vector<64x32xf32>
    %388 = tpu.matmul %387, %316, %cst_175 {dimension_numbers = #tpu.dot_dimension_numbers<[1], [0], [0], [1], [0, 0, 1, 1], [], []>} : vector<64x64xf32>, vector<64x32xf32>, vector<64x32xf32> -> vector<64x32xf32>
    %389 = arith.maximumf %371, %388 : vector<64x32xf32>
    %390 = arith.addf %320, %389 : vector<64x32xf32>
    %c0_176 = arith.constant 0 : index
    %c0_177 = arith.constant 0 : index
    %391 = vector.load %arg27[%c0_176, %c0_177] : memref<32x32xbf16, #tpu.memory_space<vmem>>, vector<32x32xbf16>
    %c0_178 = arith.constant 0 : index
    %c0_179 = arith.constant 0 : index
    %392 = vector.load %arg28[%c0_178, %c0_179] : memref<32x32xbf16, #tpu.memory_space<vmem>>, vector<32x32xbf16>
    %c0_180 = arith.constant 0 : index
    %c0_181 = arith.constant 0 : index
    %393 = vector.load %arg29[%c0_180, %c0_181] : memref<1x32xf32, #tpu.memory_space<vmem>>, vector<1x32xf32>
    %cst_182 = arith.constant dense<0.000000e+00> : vector<64x64xf32>
    %394 = tpu.matmul %390, %390, %cst_182 {dimension_numbers = #tpu.dot_dimension_numbers<[1], [1], [0], [0], [0, 0, 1, 0], [], []>} : vector<64x32xf32>, vector<64x32xf32>, vector<64x64xf32> -> vector<64x64xf32>
    %cst_183 = arith.constant 1.000000e+00 : f32
    %395 = vector.broadcast %cst_183 : f32 to vector<64x32xf32>
    %396 = arith.mulf %390, %390 : vector<64x32xf32>
    %cst_184 = arith.constant dense<0.000000e+00> : vector<64x64xf32>
    %397 = tpu.matmul %395, %396, %cst_184 {dimension_numbers = #tpu.dot_dimension_numbers<[1], [1], [0], [0], [0, 0, 1, 0], [], []>} : vector<64x32xf32>, vector<64x32xf32>, vector<64x64xf32> -> vector<64x64xf32>
    %cst_185 = arith.constant 5.000000e-01 : f32
    %398 = vector.broadcast %cst_185 : f32 to vector<64x64xf32>
    %399 = arith.cmpf ogt, %3, %398 : vector<64x64xf32>
    %cst_186 = arith.constant 2.000000e+00 : f32
    %400 = vector.broadcast %cst_186 : f32 to vector<64x64xf32>
    %401 = arith.mulf %400, %394 : vector<64x64xf32>
    %402 = arith.subf %397, %401 : vector<64x64xf32>
    %cst_187 = arith.constant 1.000000e+30 : f32
    %403 = vector.broadcast %cst_187 : f32 to vector<64x64xf32>
    %404 = arith.select %399, %402, %403 : vector<64x64xi1>, vector<64x64xf32>
    %405 = arith.truncf %390 : vector<64x32xf32> to vector<64x32xbf16>
    %cst_188 = arith.constant dense<0.000000e+00> : vector<64x32xf32>
    %406 = tpu.matmul %405, %392, %cst_188 {dimension_numbers = #tpu.dot_dimension_numbers<[1], [0], [0], [1], [0, 0, 1, 1], [], []>} : vector<64x32xbf16>, vector<32x32xbf16>, vector<64x32xf32> -> vector<64x32xf32>
    %407 = arith.truncf %390 : vector<64x32xf32> to vector<64x32xbf16>
    %cst_189 = arith.constant dense<0.000000e+00> : vector<64x32xf32>
    %408 = tpu.matmul %407, %391, %cst_189 {dimension_numbers = #tpu.dot_dimension_numbers<[1], [0], [0], [1], [0, 0, 1, 1], [], []>} : vector<64x32xbf16>, vector<32x32xbf16>, vector<64x32xf32> -> vector<64x32xf32>
    %409 = vector.broadcast %393 : vector<1x32xf32> to vector<64x32xf32>
    %410 = arith.addf %408, %409 : vector<64x32xf32>
    %cst_190 = arith.constant -1.000000e+30 : f32
    %411 = vector.broadcast %cst_190 : f32 to vector<64x32xf32>
    %cst_191 = arith.constant dense<0x7F800000> : vector<64xf32>
    %412 = vector.multi_reduction <minimumf>, %404, %cst_191 [1] : vector<64x64xf32> to vector<64xf32>
    %413 = vector.shape_cast %412 : vector<64xf32> to vector<64x1xf32>
    %414 = vector.broadcast %413 : vector<64x1xf32> to vector<64x64xf32>
    %415 = arith.cmpf ole, %404, %414 : vector<64x64xf32>
    %cst_192 = arith.constant 6.400000e+01 : f32
    %416 = vector.broadcast %cst_192 : f32 to vector<64x64xf32>
    %417 = arith.select %415, %5, %416 : vector<64x64xi1>, vector<64x64xf32>
    %cst_193 = arith.constant dense<0x7F800000> : vector<64xf32>
    %418 = vector.multi_reduction <minimumf>, %417, %cst_193 [1] : vector<64x64xf32> to vector<64xf32>
    %419 = vector.shape_cast %418 : vector<64xf32> to vector<64x1xf32>
    %420 = vector.broadcast %419 : vector<64x1xf32> to vector<64x64xf32>
    %421 = arith.cmpf oeq, %5, %420 : vector<64x64xf32>
    %422 = arith.extui %421 : vector<64x64xi1> to vector<64x64xi32>
    %423 = arith.sitofp %422 : vector<64x64xi32> to vector<64x64xf32>
    %cst_194 = arith.constant dense<0.000000e+00> : vector<64x32xf32>
    %424 = tpu.matmul %423, %406, %cst_194 {dimension_numbers = #tpu.dot_dimension_numbers<[1], [0], [0], [1], [0, 0, 1, 1], [], []>} : vector<64x64xf32>, vector<64x32xf32>, vector<64x32xf32> -> vector<64x32xf32>
    %425 = arith.maximumf %411, %424 : vector<64x32xf32>
    %cst_195 = arith.constant 5.000000e-01 : f32
    %426 = vector.broadcast %cst_195 : f32 to vector<64x64xf32>
    %427 = arith.cmpf ogt, %423, %426 : vector<64x64xf32>
    %cst_196 = arith.constant 1.000000e+30 : f32
    %428 = vector.broadcast %cst_196 : f32 to vector<64x64xf32>
    %429 = arith.select %427, %428, %404 : vector<64x64xi1>, vector<64x64xf32>
    %cst_197 = arith.constant dense<0x7F800000> : vector<64xf32>
    %430 = vector.multi_reduction <minimumf>, %429, %cst_197 [1] : vector<64x64xf32> to vector<64xf32>
    %431 = vector.shape_cast %430 : vector<64xf32> to vector<64x1xf32>
    %432 = vector.broadcast %431 : vector<64x1xf32> to vector<64x64xf32>
    %433 = arith.cmpf ole, %429, %432 : vector<64x64xf32>
    %cst_198 = arith.constant 6.400000e+01 : f32
    %434 = vector.broadcast %cst_198 : f32 to vector<64x64xf32>
    %435 = arith.select %433, %5, %434 : vector<64x64xi1>, vector<64x64xf32>
    %cst_199 = arith.constant dense<0x7F800000> : vector<64xf32>
    %436 = vector.multi_reduction <minimumf>, %435, %cst_199 [1] : vector<64x64xf32> to vector<64xf32>
    %437 = vector.shape_cast %436 : vector<64xf32> to vector<64x1xf32>
    %438 = vector.broadcast %437 : vector<64x1xf32> to vector<64x64xf32>
    %439 = arith.cmpf oeq, %5, %438 : vector<64x64xf32>
    %440 = arith.extui %439 : vector<64x64xi1> to vector<64x64xi32>
    %441 = arith.sitofp %440 : vector<64x64xi32> to vector<64x64xf32>
    %cst_200 = arith.constant dense<0.000000e+00> : vector<64x32xf32>
    %442 = tpu.matmul %441, %406, %cst_200 {dimension_numbers = #tpu.dot_dimension_numbers<[1], [0], [0], [1], [0, 0, 1, 1], [], []>} : vector<64x64xf32>, vector<64x32xf32>, vector<64x32xf32> -> vector<64x32xf32>
    %443 = arith.maximumf %425, %442 : vector<64x32xf32>
    %cst_201 = arith.constant 5.000000e-01 : f32
    %444 = vector.broadcast %cst_201 : f32 to vector<64x64xf32>
    %445 = arith.cmpf ogt, %441, %444 : vector<64x64xf32>
    %cst_202 = arith.constant 1.000000e+30 : f32
    %446 = vector.broadcast %cst_202 : f32 to vector<64x64xf32>
    %447 = arith.select %445, %446, %429 : vector<64x64xi1>, vector<64x64xf32>
    %cst_203 = arith.constant dense<0x7F800000> : vector<64xf32>
    %448 = vector.multi_reduction <minimumf>, %447, %cst_203 [1] : vector<64x64xf32> to vector<64xf32>
    %449 = vector.shape_cast %448 : vector<64xf32> to vector<64x1xf32>
    %450 = vector.broadcast %449 : vector<64x1xf32> to vector<64x64xf32>
    %451 = arith.cmpf ole, %447, %450 : vector<64x64xf32>
    %cst_204 = arith.constant 6.400000e+01 : f32
    %452 = vector.broadcast %cst_204 : f32 to vector<64x64xf32>
    %453 = arith.select %451, %5, %452 : vector<64x64xi1>, vector<64x64xf32>
    %cst_205 = arith.constant dense<0x7F800000> : vector<64xf32>
    %454 = vector.multi_reduction <minimumf>, %453, %cst_205 [1] : vector<64x64xf32> to vector<64xf32>
    %455 = vector.shape_cast %454 : vector<64xf32> to vector<64x1xf32>
    %456 = vector.broadcast %455 : vector<64x1xf32> to vector<64x64xf32>
    %457 = arith.cmpf oeq, %5, %456 : vector<64x64xf32>
    %458 = arith.extui %457 : vector<64x64xi1> to vector<64x64xi32>
    %459 = arith.sitofp %458 : vector<64x64xi32> to vector<64x64xf32>
    %cst_206 = arith.constant dense<0.000000e+00> : vector<64x32xf32>
    %460 = tpu.matmul %459, %406, %cst_206 {dimension_numbers = #tpu.dot_dimension_numbers<[1], [0], [0], [1], [0, 0, 1, 1], [], []>} : vector<64x64xf32>, vector<64x32xf32>, vector<64x32xf32> -> vector<64x32xf32>
    %461 = arith.maximumf %443, %460 : vector<64x32xf32>
    %cst_207 = arith.constant 5.000000e-01 : f32
    %462 = vector.broadcast %cst_207 : f32 to vector<64x64xf32>
    %463 = arith.cmpf ogt, %459, %462 : vector<64x64xf32>
    %cst_208 = arith.constant 1.000000e+30 : f32
    %464 = vector.broadcast %cst_208 : f32 to vector<64x64xf32>
    %465 = arith.select %463, %464, %447 : vector<64x64xi1>, vector<64x64xf32>
    %cst_209 = arith.constant dense<0x7F800000> : vector<64xf32>
    %466 = vector.multi_reduction <minimumf>, %465, %cst_209 [1] : vector<64x64xf32> to vector<64xf32>
    %467 = vector.shape_cast %466 : vector<64xf32> to vector<64x1xf32>
    %468 = vector.broadcast %467 : vector<64x1xf32> to vector<64x64xf32>
    %469 = arith.cmpf ole, %465, %468 : vector<64x64xf32>
    %cst_210 = arith.constant 6.400000e+01 : f32
    %470 = vector.broadcast %cst_210 : f32 to vector<64x64xf32>
    %471 = arith.select %469, %5, %470 : vector<64x64xi1>, vector<64x64xf32>
    %cst_211 = arith.constant dense<0x7F800000> : vector<64xf32>
    %472 = vector.multi_reduction <minimumf>, %471, %cst_211 [1] : vector<64x64xf32> to vector<64xf32>
    %473 = vector.shape_cast %472 : vector<64xf32> to vector<64x1xf32>
    %474 = vector.broadcast %473 : vector<64x1xf32> to vector<64x64xf32>
    %475 = arith.cmpf oeq, %5, %474 : vector<64x64xf32>
    %476 = arith.extui %475 : vector<64x64xi1> to vector<64x64xi32>
    %477 = arith.sitofp %476 : vector<64x64xi32> to vector<64x64xf32>
    %cst_212 = arith.constant dense<0.000000e+00> : vector<64x32xf32>
    %478 = tpu.matmul %477, %406, %cst_212 {dimension_numbers = #tpu.dot_dimension_numbers<[1], [0], [0], [1], [0, 0, 1, 1], [], []>} : vector<64x64xf32>, vector<64x32xf32>, vector<64x32xf32> -> vector<64x32xf32>
    %479 = arith.maximumf %461, %478 : vector<64x32xf32>
    %480 = arith.addf %410, %479 : vector<64x32xf32>
    %c0_213 = arith.constant 0 : index
    %c0_214 = arith.constant 0 : index
    %481 = vector.load %arg30[%c0_213, %c0_214] : memref<1x32xf32, #tpu.memory_space<vmem>>, vector<1x32xf32>
    %482 = vector.broadcast %481 : vector<1x32xf32> to vector<64x32xf32>
    %483 = arith.mulf %480, %482 : vector<64x32xf32>
    %c0_215 = arith.constant 0 : index
    %c0_216 = arith.constant 0 : index
    %484 = vector.load %arg31[%c0_215, %c0_216] : memref<1x32xf32, #tpu.memory_space<vmem>>, vector<1x32xf32>
    %485 = vector.broadcast %484 : vector<1x32xf32> to vector<64x32xf32>
    %486 = arith.addf %483, %485 : vector<64x32xf32>
    %487 = vector.shape_cast %2 : vector<2x64xf32> to vector<2x64x1xf32>
    %cst_217 = arith.constant 5.000000e-01 : f32
    %488 = vector.broadcast %cst_217 : f32 to vector<2x64x1xf32>
    %489 = arith.cmpf ogt, %487, %488 : vector<2x64x1xf32>
    %490 = vector.shape_cast %486 : vector<64x32xf32> to vector<1x64x32xf32>
    %cst_218 = arith.constant -1.000000e+30 : f32
    %491 = vector.shape_cast %489 : vector<2x64x1xi1> to vector<2x64x1xi1>
    %492 = vector.broadcast %491 : vector<2x64x1xi1> to vector<2x64x32xi1>
    %493 = vector.shape_cast %490 : vector<1x64x32xf32> to vector<1x64x32xf32>
    %494 = vector.broadcast %493 : vector<1x64x32xf32> to vector<2x64x32xf32>
    %495 = vector.broadcast %cst_218 : f32 to vector<2x64x32xf32>
    %496 = arith.select %492, %494, %495 : vector<2x64x32xi1>, vector<2x64x32xf32>
    %cst_219 = arith.constant dense<0xFF800000> : vector<2x32xf32>
    %497 = vector.multi_reduction <maximumf>, %496, %cst_219 [1] : vector<2x64x32xf32> to vector<2x32xf32>
    %c0_220 = arith.constant 0 : index
    %c0_221 = arith.constant 0 : index
    %498 = vector.load %arg32[%c0_220, %c0_221] : memref<64x128xbf16, #tpu.memory_space<vmem>>, vector<64x128xbf16>
    %499 = arith.truncf %56 : vector<2x64xf32> to vector<2x64xbf16>
    %cst_222 = arith.constant dense<0.000000e+00> : vector<2x128xf32>
    %500 = tpu.matmul %499, %498, %cst_222 {dimension_numbers = #tpu.dot_dimension_numbers<[1], [0], [0], [1], [0, 0, 1, 1], [], []>} : vector<2x64xbf16>, vector<64x128xbf16>, vector<2x128xf32> -> vector<2x128xf32>
    %c0_223 = arith.constant 0 : index
    %c0_224 = arith.constant 0 : index
    %501 = vector.load %arg33[%c0_223, %c0_224] : memref<32x128xbf16, #tpu.memory_space<vmem>>, vector<32x128xbf16>
    %502 = arith.truncf %103 : vector<2x32xf32> to vector<2x32xbf16>
    %cst_225 = arith.constant dense<0.000000e+00> : vector<2x128xf32>
    %503 = tpu.matmul %502, %501, %cst_225 {dimension_numbers = #tpu.dot_dimension_numbers<[1], [0], [0], [1], [0, 0, 1, 1], [], []>} : vector<2x32xbf16>, vector<32x128xbf16>, vector<2x128xf32> -> vector<2x128xf32>
    %504 = arith.addf %500, %503 : vector<2x128xf32>
    %c0_226 = arith.constant 0 : index
    %c0_227 = arith.constant 0 : index
    %505 = vector.load %arg34[%c0_226, %c0_227] : memref<64x128xbf16, #tpu.memory_space<vmem>>, vector<64x128xbf16>
    %506 = arith.truncf %300 : vector<2x64xf32> to vector<2x64xbf16>
    %cst_228 = arith.constant dense<0.000000e+00> : vector<2x128xf32>
    %507 = tpu.matmul %506, %505, %cst_228 {dimension_numbers = #tpu.dot_dimension_numbers<[1], [0], [0], [1], [0, 0, 1, 1], [], []>} : vector<2x64xbf16>, vector<64x128xbf16>, vector<2x128xf32> -> vector<2x128xf32>
    %508 = arith.addf %504, %507 : vector<2x128xf32>
    %c0_229 = arith.constant 0 : index
    %c0_230 = arith.constant 0 : index
    %509 = vector.load %arg35[%c0_229, %c0_230] : memref<32x128xbf16, #tpu.memory_space<vmem>>, vector<32x128xbf16>
    %510 = arith.truncf %497 : vector<2x32xf32> to vector<2x32xbf16>
    %cst_231 = arith.constant dense<0.000000e+00> : vector<2x128xf32>
    %511 = tpu.matmul %510, %509, %cst_231 {dimension_numbers = #tpu.dot_dimension_numbers<[1], [0], [0], [1], [0, 0, 1, 1], [], []>} : vector<2x32xbf16>, vector<32x128xbf16>, vector<2x128xf32> -> vector<2x128xf32>
    %512 = arith.addf %508, %511 : vector<2x128xf32>
    %c0_232 = arith.constant 0 : index
    %c0_233 = arith.constant 0 : index
    %513 = vector.load %arg36[%c0_232, %c0_233] : memref<1x128xf32, #tpu.memory_space<vmem>>, vector<1x128xf32>
    %514 = vector.broadcast %513 : vector<1x128xf32> to vector<2x128xf32>
    %515 = arith.addf %512, %514 : vector<2x128xf32>
    %c0_234 = arith.constant 0 : index
    %c0_235 = arith.constant 0 : index
    %516 = vector.load %arg37[%c0_234, %c0_235] : memref<128x32xbf16, #tpu.memory_space<vmem>>, vector<128x32xbf16>
    %517 = arith.truncf %515 : vector<2x128xf32> to vector<2x128xbf16>
    %cst_236 = arith.constant dense<0.000000e+00> : vector<2x32xf32>
    %518 = tpu.matmul %517, %516, %cst_236 {dimension_numbers = #tpu.dot_dimension_numbers<[1], [0], [0], [1], [0, 0, 1, 1], [], []>} : vector<2x128xbf16>, vector<128x32xbf16>, vector<2x32xf32> -> vector<2x32xf32>
    %c0_237 = arith.constant 0 : index
    %c0_238 = arith.constant 0 : index
    %519 = vector.load %arg38[%c0_237, %c0_238] : memref<1x32xf32, #tpu.memory_space<vmem>>, vector<1x32xf32>
    %520 = vector.broadcast %519 : vector<1x32xf32> to vector<2x32xf32>
    %521 = arith.addf %518, %520 : vector<2x32xf32>
    %cst_239 = arith.constant 0.000000e+00 : f32
    %522 = vector.broadcast %cst_239 : f32 to vector<2x32xf32>
    %523 = arith.maximumf %521, %522 : vector<2x32xf32>
    %c0_240 = arith.constant 0 : index
    %c0_241 = arith.constant 0 : index
    %524 = vector.load %arg39[%c0_240, %c0_241] : memref<32x8xbf16, #tpu.memory_space<vmem>>, vector<32x8xbf16>
    %525 = arith.truncf %523 : vector<2x32xf32> to vector<2x32xbf16>
    %cst_242 = arith.constant dense<0.000000e+00> : vector<2x8xf32>
    %526 = tpu.matmul %525, %524, %cst_242 {dimension_numbers = #tpu.dot_dimension_numbers<[1], [0], [0], [1], [0, 0, 1, 1], [], []>} : vector<2x32xbf16>, vector<32x8xbf16>, vector<2x8xf32> -> vector<2x8xf32>
    %c0_243 = arith.constant 0 : index
    %c0_244 = arith.constant 0 : index
    %527 = vector.load %arg40[%c0_243, %c0_244] : memref<1x8xf32, #tpu.memory_space<vmem>>, vector<1x8xf32>
    %528 = vector.broadcast %527 : vector<1x8xf32> to vector<2x8xf32>
    %529 = arith.addf %526, %528 : vector<2x8xf32>
    %c0_245 = arith.constant 0 : index
    %c0_246 = arith.constant 0 : index
    %530 = vector.load %arg41[%c0_245, %c0_246] : memref<2x8xf32, #tpu.memory_space<vmem>>, vector<2x8xf32>
    tpu.vector_store %arg41[%c0_245, %c0_246], %529 {strides = array<i32>} : memref<2x8xf32, #tpu.memory_space<vmem>>, vector<2x8xf32>,
    return
  }
}

</mosaic_0001>

<bundles_post_ra>
// kernel: mul.1
= control target key start
LH: loop header
LB: loop body
LE: loop exit
PB: predicated region body
PF: predicated region fallthrough
CT: control target
= control target key end

     0   :  { %s34_s0 = inlined_call_operand.vmem [shape: f32[256], index: 0, kind: input, shape index: {}]   ;;  %s35_s1 = inlined_call_operand.vmem [shape: f32[256], index: 1, kind: input, shape index: {}]   ;;  %s36_s2 = inlined_call_operand.vmem [shape: f32[256], index: 2, kind: output, shape index: {}]  }
   0x1   :  { %v3_v0 = vld [vmem:[%s34_s0] sm:$0x3] }
   0x2   :  { %v4_v1 = vld [vmem:[%s35_s1] sm:$0x3] }
   0x3   :  { %v7_v2 = vmul.f32 %v4_v1, %v3_v0 }
   0x5   :  { %9 = vst [vmem:[%s36_s2] sm:$0x3] %v7_v2 }

</bundles_post_ra>
